<compile_context>
chip_gen: v6e
topology: v6e:2x2x1
jax: 0.10.0
libtpu: 0.0.40
codegen_flags: <defaults>
</compile_context>

<pallas_src>
import functools

import jax
import jax.numpy as jnp
from jax import lax
from jax.experimental import pallas as pl
from jax.experimental.pallas import tpu as pltpu


def _round_up(x, m):
    return ((x + m - 1) // m) * m


def ffn_kernel(x_ref, w1_ref, b1_ref, w2_ref, b2_ref, o_ref, acc_ref):
    # x_ref:  (tm, d_model_p)      bf16
    # w1_ref: (tff, d_model_p)     bf16   (PyTorch layout: (d_ff, d_model) chunk)
    # b1_ref: (1, tff)             f32
    # w2_ref: (d_model_p, tff)     bf16   (PyTorch layout: (d_model, d_ff) chunk)
    # b2_ref: (1, d_model_p)       f32
    # o_ref:  (tm, d_model_p)      out dtype
    # acc_ref:(tm, d_model_p)      f32 scratch, resident across the d_ff axis
    k = pl.program_id(1)

    @pl.when(k == 0)
    def _():
        acc_ref[...] = jnp.zeros_like(acc_ref)

    # h = x @ W1_chunk.T + b1_chunk   -> (tm, tff), f32 accumulate on the MXU
    h = lax.dot_general(
        x_ref[...], w1_ref[...],
        dimension_numbers=(((1,), (1,)), ((), ())),
        preferred_element_type=jnp.float32,
    ) + b1_ref[...]
    h = jnp.maximum(h, 0.0)          # ReLU (f32, VPU)
    # dropout: identity in eval mode

    # acc += relu(h) @ W2_chunk.T     -> (tm, d_model_p)
    acc_ref[...] += lax.dot_general(
        h.astype(w2_ref.dtype), w2_ref[...],
        dimension_numbers=(((1,), (1,)), ((), ())),
        preferred_element_type=jnp.float32,
    )

    @pl.when(k == pl.num_programs(1) - 1)
    def _():
        o_ref[...] = (acc_ref[...] + b2_ref[...]).astype(o_ref.dtype)


def _ffn_vmem_bytes(tm, tff, d_model_p, out_itemsize):
    dbl = 2  # BlockSpec double-buffering
    n = 0
    n += dbl * tm * d_model_p * 2             # x tile (bf16)
    n += dbl * tff * d_model_p * 2            # w1 tile (bf16)
    n += dbl * tff * 4                        # b1 tile (f32)
    n += dbl * d_model_p * tff * 2            # w2 tile (bf16)
    n += dbl * d_model_p * 4                  # b2 tile (f32)
    n += dbl * tm * d_model_p * out_itemsize  # out tile
    n += tm * d_model_p * 4                   # f32 accumulator scratch
    return n


@jax.jit
def position_wise_feed_forward(x, w1, b1, w2, b2):
    """x: (B, S, d_model); w1: (d_ff, d_model); b1: (d_ff,);
       w2: (d_model, d_ff); b2: (d_model,)  -- PyTorch nn.Linear param shapes."""
    B, S, d_model = x.shape
    d_ff = w1.shape[0]
    M = B * S

    # Lane-dense padding (multiples of 128) for MXU/vreg efficiency and unmasked stores.
    d_model_p = _round_up(d_model, 128)
    d_ff_p = _round_up(d_ff, 128)

    # Row tiling: 256 rows feeds the 2x256 MXU on v6e/v7x and is an 8-multiple always.
    tm = 256 if M >= 256 else _round_up(M, 8)
    M_p = _round_up(M, tm)

    # d_ff (reduction) tiling: largest of {512, 256, 128} that divides d_ff_p.
    if d_ff_p % 512 == 0:
        tff = 512
    elif d_ff_p % 256 == 0:
        tff = 256
    else:
        tff = 128

    # Pad + cast matmul operands to bf16 (f32 accumulation inside the kernel).
    x2d = jnp.pad(x.reshape(M, d_model),
                  ((0, M_p - M), (0, d_model_p - d_model))).astype(jnp.bfloat16)
    w1_p = jnp.pad(w1, ((0, d_ff_p - d_ff), (0, d_model_p - d_model))).astype(jnp.bfloat16)
    w2_p = jnp.pad(w2, ((0, d_model_p - d_model), (0, d_ff_p - d_ff))).astype(jnp.bfloat16)
    b1_p = jnp.pad(b1, (0, d_ff_p - d_ff)).reshape(1, d_ff_p).astype(jnp.float32)
    b2_p = jnp.pad(b2, (0, d_model_p - d_model)).reshape(1, d_model_p).astype(jnp.float32)

    out_dtype = x.dtype
    out_itemsize = jnp.dtype(out_dtype).itemsize
    vmem_needed = _ffn_vmem_bytes(tm, tff, d_model_p, out_itemsize)
    # Leave headroom: cap below v7x's 64 MiB physical VMEM per TensorCore.
    vmem_limit = int(min(max(4 * vmem_needed, 32 * 1024 * 1024), 56 * 1024 * 1024))

    grid = (M_p // tm, d_ff_p // tff)

    flops = 2 * M_p * d_model_p * d_ff_p * 2  # two matmuls
    bytes_accessed = (
        M_p * d_model_p * 2                       # x (bf16)
        + 2 * d_ff_p * d_model_p * 2              # w1 + w2 (bf16)
        + (d_ff_p + d_model_p) * 4                # biases
        + M_p * d_model_p * out_itemsize          # output
    )

    out2d = pl.pallas_call(
        ffn_kernel,
        out_shape=jax.ShapeDtypeStruct((M_p, d_model_p), out_dtype),
        grid_spec=pltpu.PrefetchScalarGridSpec(
            num_scalar_prefetch=0,
            grid=grid,
            in_specs=[
                pl.BlockSpec((tm, d_model_p), lambda i, k: (i, 0)),        # x
                pl.BlockSpec((tff, d_model_p), lambda i, k: (k, 0)),       # w1 (d_ff, d_model)
                pl.BlockSpec((1, tff), lambda i, k: (0, k)),               # b1
                pl.BlockSpec((d_model_p, tff), lambda i, k: (0, k)),       # w2 (d_model, d_ff)
                pl.BlockSpec((1, d_model_p), lambda i, k: (0, 0)),         # b2
            ],
            out_specs=pl.BlockSpec((tm, d_model_p), lambda i, k: (i, 0)),
            scratch_shapes=[pltpu.VMEM((tm, d_model_p), jnp.float32)],
        ),
        compiler_params=pltpu.CompilerParams(
            dimension_semantics=("parallel", "arbitrary"),
            vmem_limit_bytes=vmem_limit,
        ),
        cost_estimate=pl.CostEstimate(
            flops=flops, transcendentals=0, bytes_accessed=bytes_accessed),
    )(x2d, w1_p, b1_p, w2_p, b2_p)

    return out2d[:M, :d_model].reshape(B, S, d_model)


if __name__ == "__main__":
    # Small shapes consistent with the module: (batch, seq, d_model)
    B, S, d_model, d_ff = 2, 8, 32, 64

    key = jax.random.PRNGKey(0)
    kx, kw1, kb1, kw2, kb2 = jax.random.split(key, 5)

    x = jax.random.normal(kx, (B, S, d_model), dtype=jnp.float32)
    # Deterministic parameter init (PyTorch nn.Linear shapes: (out, in) + (out,))
    w1 = jax.random.normal(kw1, (d_ff, d_model), dtype=jnp.float32) * 0.1
    b1 = jax.random.normal(kb1, (d_ff,), dtype=jnp.float32) * 0.1
    w2 = jax.random.normal(kw2, (d_model, d_ff), dtype=jnp.float32) * 0.1
    b2 = jax.random.normal(kb2, (d_model,), dtype=jnp.float32) * 0.1

    out = position_wise_feed_forward(x, w1, b1, w2, b2)
    jax.block_until_ready(out)

    # Pure-JAX f32 reference (kernel uses bf16 MXU operands -> loosened tolerance).
    ref = jnp.maximum(x @ w1.T + b1, 0.0) @ w2.T + b2
    assert out.shape == (B, S, d_model)
    assert jnp.allclose(out, ref, atol=3e-2, rtol=3e-2), (
        f"max abs err {jnp.max(jnp.abs(out - ref))}")

    print("KERNEL_OK")
</pallas_src>

<mosaic_0001>
module attributes {stable_mosaic.version = 11 : i64} {
  func.func @ffn_kernel(%arg0: i32, %arg1: i32, %arg2: memref<16x128xbf16, #tpu.memory_space<vmem>>, %arg3: memref<128x128xbf16, #tpu.memory_space<vmem>>, %arg4: memref<1x128xf32, #tpu.memory_space<vmem>>, %arg5: memref<128x128xbf16, #tpu.memory_space<vmem>>, %arg6: memref<1x128xf32, #tpu.memory_space<vmem>>, %arg7: memref<16x128xf32, #tpu.memory_space<vmem>>, %arg8: memref<16x128xf32, #tpu.memory_space<vmem>>) attributes {dimension_semantics = [#tpu.dimension_semantics<parallel>, #tpu.dimension_semantics<arbitrary>], iteration_bounds = array<i64: 1, 1>, scalar_prefetch = 0 : i64, scratch_operands = 1 : i64, tpu.core_type = #tpu.core_type<tc>, window_params = [{transform_indices = @transform_0, window_bounds = array<i64: 16, 128>}, {transform_indices = @transform_1, window_bounds = array<i64: 128, 128>}, {transform_indices = @transform_2, window_bounds = array<i64: 1, 128>}, {transform_indices = @transform_3, window_bounds = array<i64: 128, 128>}, {pipeline_mode = #tpu.pipeline_mode<synchronous>, transform_indices = @transform_4, window_bounds = array<i64: 1, 128>}, {transform_indices = @transform_5, window_bounds = array<i64: 16, 128>}]} {
    %c0_i32 = arith.constant 0 : i32
    %0 = arith.cmpi eq, %arg1, %c0_i32 : i32
    %1 = arith.extui %0 : i1 to i32
    %c0_i32_0 = arith.constant 0 : i32
    %2 = arith.cmpi ne, %1, %c0_i32_0 : i32
    scf.if %2 {
      %cst_16 = arith.constant 0.000000e+00 : f32
      %20 = vector.broadcast %cst_16 : f32 to vector<16x128xf32>
      %c0_17 = arith.constant 0 : index
      %c0_18 = arith.constant 0 : index
      %21 = vector.load %arg8[%c0_17, %c0_18] : memref<16x128xf32, #tpu.memory_space<vmem>>, vector<16x128xf32>
      tpu.vector_store %arg8[%c0_17, %c0_18], %20 {strides = array<i32>} : memref<16x128xf32, #tpu.memory_space<vmem>>, vector<16x128xf32>,
    } else {
    }
    %c0 = arith.constant 0 : index
    %c0_1 = arith.constant 0 : index
    %3 = vector.load %arg2[%c0, %c0_1] : memref<16x128xbf16, #tpu.memory_space<vmem>>, vector<16x128xbf16>
    %c0_2 = arith.constant 0 : index
    %c0_3 = arith.constant 0 : index
    %4 = vector.load %arg3[%c0_2, %c0_3] : memref<128x128xbf16, #tpu.memory_space<vmem>>, vector<128x128xbf16>
    %cst = arith.constant dense<0.000000e+00> : vector<16x128xf32>
    %5 = tpu.matmul %3, %4, %cst {dimension_numbers = #tpu.dot_dimension_numbers<[1], [1], [0], [0], [0, 0, 1, 0], [], []>} : vector<16x128xbf16>, vector<128x128xbf16>, vector<16x128xf32> -> vector<16x128xf32>
    %c0_4 = arith.constant 0 : index
    %c0_5 = arith.constant 0 : index
    %6 = vector.load %arg4[%c0_4, %c0_5] : memref<1x128xf32, #tpu.memory_space<vmem>>, vector<1x128xf32>
    %7 = vector.broadcast %6 : vector<1x128xf32> to vector<16x128xf32>
    %8 = arith.addf %5, %7 : vector<16x128xf32>
    %cst_6 = arith.constant 0.000000e+00 : f32
    %9 = vector.broadcast %cst_6 : f32 to vector<16x128xf32>
    %10 = arith.maximumf %8, %9 : vector<16x128xf32>
    %c0_7 = arith.constant 0 : index
    %c0_8 = arith.constant 0 : index
    %11 = vector.load %arg8[%c0_7, %c0_8] : memref<16x128xf32, #tpu.memory_space<vmem>>, vector<16x128xf32>
    %12 = arith.truncf %10 : vector<16x128xf32> to vector<16x128xbf16>
    %c0_9 = arith.constant 0 : index
    %c0_10 = arith.constant 0 : index
    %13 = vector.load %arg5[%c0_9, %c0_10] : memref<128x128xbf16, #tpu.memory_space<vmem>>, vector<128x128xbf16>
    %cst_11 = arith.constant dense<0.000000e+00> : vector<16x128xf32>
    %14 = tpu.matmul %12, %13, %cst_11 {dimension_numbers = #tpu.dot_dimension_numbers<[1], [1], [0], [0], [0, 0, 1, 0], [], []>} : vector<16x128xbf16>, vector<128x128xbf16>, vector<16x128xf32> -> vector<16x128xf32>
    %15 = arith.addf %11, %14 : vector<16x128xf32>
    %c0_12 = arith.constant 0 : index
    %c0_13 = arith.constant 0 : index
    %16 = vector.load %arg8[%c0_12, %c0_13] : memref<16x128xf32, #tpu.memory_space<vmem>>, vector<16x128xf32>
    tpu.vector_store %arg8[%c0_12, %c0_13], %15 {strides = array<i32>} : memref<16x128xf32, #tpu.memory_space<vmem>>, vector<16x128xf32>,
    %c0_i32_14 = arith.constant 0 : i32
    %17 = arith.cmpi eq, %arg1, %c0_i32_14 : i32
    %18 = arith.extui %17 : i1 to i32
    %c0_i32_15 = arith.constant 0 : i32
    %19 = arith.cmpi ne, %18, %c0_i32_15 : i32
    scf.if %19 {
      %c0_16 = arith.constant 0 : index
      %c0_17 = arith.constant 0 : index
      %20 = vector.load %arg8[%c0_16, %c0_17] : memref<16x128xf32, #tpu.memory_space<vmem>>, vector<16x128xf32>
      %c0_18 = arith.constant 0 : index
      %c0_19 = arith.constant 0 : index
      %21 = vector.load %arg6[%c0_18, %c0_19] : memref<1x128xf32, #tpu.memory_space<vmem>>, vector<1x128xf32>
      %22 = vector.broadcast %21 : vector<1x128xf32> to vector<16x128xf32>
      %23 = arith.addf %20, %22 : vector<16x128xf32>
      %c0_20 = arith.constant 0 : index
      %c0_21 = arith.constant 0 : index
      %24 = vector.load %arg7[%c0_20, %c0_21] : memref<16x128xf32, #tpu.memory_space<vmem>>, vector<16x128xf32>
      tpu.vector_store %arg7[%c0_20, %c0_21], %23 {strides = array<i32>} : memref<16x128xf32, #tpu.memory_space<vmem>>, vector<16x128xf32>,
    } else {
    }
    return
  }
  func.func @transform_0(%arg0: i32, %arg1: i32) -> (i32, i32) {
    %c0_i32 = arith.constant 0 : i32
    %c0_i32_0 = arith.constant 0 : i32
    return %arg0, %c0_i32 : i32, i32
  }
  func.func @transform_1(%arg0: i32, %arg1: i32) -> (i32, i32) {
    %c0_i32 = arith.constant 0 : i32
    %c0_i32_0 = arith.constant 0 : i32
    return %arg1, %c0_i32 : i32, i32
  }
  func.func @transform_2(%arg0: i32, %arg1: i32) -> (i32, i32) {
    %c0_i32 = arith.constant 0 : i32
    %c0_i32_0 = arith.constant 0 : i32
    return %c0_i32, %arg1 : i32, i32
  }
  func.func @transform_3(%arg0: i32, %arg1: i32) -> (i32, i32) {
    %c0_i32 = arith.constant 0 : i32
    %c0_i32_0 = arith.constant 0 : i32
    return %c0_i32, %arg1 : i32, i32
  }
  func.func @transform_4(%arg0: i32, %arg1: i32) -> (i32, i32) {
    %c0_i32 = arith.constant 0 : i32
    %c0_i32_0 = arith.constant 0 : i32
    %c0_i32_1 = arith.constant 0 : i32
    return %c0_i32, %c0_i32_0 : i32, i32
  }
  func.func @transform_5(%arg0: i32, %arg1: i32) -> (i32, i32) {
    %c0_i32 = arith.constant 0 : i32
    %c0_i32_0 = arith.constant 0 : i32
    return %arg0, %c0_i32 : i32, i32
  }
}

</mosaic_0001>

<bundles_post_ra>
// kernel: position_wise_feed_forward.1
= control target key start
LH: loop header
LB: loop body
LE: loop exit
PB: predicated region body
PF: predicated region fallthrough
CT: control target
= control target key end

     0   :  { %v377_v0 = vmov 0.0   ;;  %vm378_vm0 = vmmov 0   ;;  %s472_s1 = inlined_call_operand.vmem [shape: bf16[128,128], index: 1, kind: input, shape index: {}]   ;;  %s473_s3 = inlined_call_operand.vmem [shape: bf16[128,128], index: 3, kind: input, shape index: {}]   ;;  %s474_s0 = inlined_call_operand.vmem [shape: bf16[16,128], index: 0, kind: input, shape index: {}]   ;;  %s475_s2 = inlined_call_operand.vmem [shape: f32[1,128], index: 2, kind: input, shape index: {}]   ;;  %s476_s4 = inlined_call_operand.vmem [shape: f32[1,128], index: 4, kind: input, shape index: {}]   ;;  %s477_s5 = inlined_call_operand.vmem [shape: f32[16,128], index: 5, kind: output, shape index: {}]  }
   0x1   :  { %318 = vmatprep.subr.bf16.mxu0 %v377_v0  ;;  %v360_v1 = vld [vmem:[%s472_s1 + $0x38] sm:$0xff]   ;;  %334 = vmatprep.mubr.msk.bf16.mxu0 %vm378_vm0, %v377_v0  ;;  %v361_v2 = vld [vmem:[%s472_s1 + $0x30] sm:$0xff]   ;;  %v362_v4 = vld [vmem:[%s472_s1 + $0x28] sm:$0xff]  }
   0x2   :  { %338 = vmatprep.subr.bf16.mxu1 %v377_v0  ;;  %354 = vmatprep.mubr.msk.bf16.mxu1 %vm378_vm0, %v377_v0  ;;  %v369_v3 = vld [vmem:[%s473_s3 + $0x38] sm:$0xff]   ;;  %v370_v5 = vld [vmem:[%s473_s3 + $0x30] sm:$0xff]   ;;  %v363_v6 = vld [vmem:[%s472_s1 + $0x20] sm:$0xff]  }
   0x3   :  { %319 = vmatpush3.bf16.xpose.msra.mxu0 %v360_v1  ;;  %339 = vmatpush3.bf16.xpose.msra.mxu1 %v369_v3  ;;  %v371_v7 = vld [vmem:[%s473_s3 + $0x28] sm:$0xff]   ;;  %v364_v8 = vld [vmem:[%s472_s1 + $0x18] sm:$0xff]   ;;  %v372_v9 = vld [vmem:[%s473_s3 + $0x20] sm:$0xff]  }
   0x4   :  { %320 = vmatprep.subr.bf16.mxu0 %v377_v0  ;;  %340 = vmatprep.subr.bf16.mxu1 %v377_v0  ;;  %v365_v10 = vld [vmem:[%s472_s1 + $0x10] sm:$0xff]   ;;  %v373_v11 = vld [vmem:[%s473_s3 + $0x18] sm:$0xff]   ;;  %v366_v12 = vld [vmem:[%s472_s1 + $0x8] sm:$0xff]  }
   0x5   :  { %v374_v13 = vld [vmem:[%s473_s3 + $0x10] sm:$0xff]   ;;  %v367_v14 = vld [vmem:[%s472_s1] sm:$0xff]   ;;  %v375_v15 = vld [vmem:[%s473_s3 + $0x8] sm:$0xff]  }
   0x6   :  { %v368_v16 = vld [vmem:[%s474_s0] sm:$0xff]  }
   0x7   :  { %v376_v17 = vld [vmem:[%s473_s3] sm:$0xff]  }
   0x8   :  { %v281_v18 = vld [vmem:[%s475_s2] ss:$0 sm:$0xff] }
   0x9   :  { %v299_v28 = vld [vmem:[%s476_s4] ss:$0 sm:$0xff] }
   0xb   :  { %321 = vmatpush3.bf16.xpose.msra.mxu0 %v361_v2  ;;  %341 = vmatpush3.bf16.xpose.msra.mxu1 %v370_v5 }
   0xc   :  { %322 = vmatprep.subr.bf16.mxu0 %v377_v0  ;;  %342 = vmatprep.subr.bf16.mxu1 %v377_v0 }
  0x13   :  { %323 = vmatpush3.bf16.xpose.msra.mxu0 %v362_v4  ;;  %343 = vmatpush3.bf16.xpose.msra.mxu1 %v371_v7 }
  0x14   :  { %324 = vmatprep.subr.bf16.mxu0 %v377_v0  ;;  %344 = vmatprep.subr.bf16.mxu1 %v377_v0 }
  0x1b   :  { %325 = vmatpush3.bf16.xpose.msra.mxu0 %v363_v6  ;;  %345 = vmatpush3.bf16.xpose.msra.mxu1 %v372_v9 }
  0x1c   :  { %326 = vmatprep.subr.bf16.mxu0 %v377_v0  ;;  %346 = vmatprep.subr.bf16.mxu1 %v377_v0 }
  0x23   :  { %327 = vmatpush3.bf16.xpose.msra.mxu0 %v364_v8  ;;  %347 = vmatpush3.bf16.xpose.msra.mxu1 %v373_v11 }
  0x24   :  { %328 = vmatprep.subr.bf16.mxu0 %v377_v0  ;;  %348 = vmatprep.subr.bf16.mxu1 %v377_v0 }
  0x2b   :  { %329 = vmatpush3.bf16.xpose.msra.mxu0 %v365_v10  ;;  %349 = vmatpush3.bf16.xpose.msra.mxu1 %v374_v13 }
  0x2c   :  { %330 = vmatprep.subr.bf16.mxu0 %v377_v0  ;;  %350 = vmatprep.subr.bf16.mxu1 %v377_v0 }
  0x33   :  { %331 = vmatpush3.bf16.xpose.msra.mxu0 %v366_v12  ;;  %351 = vmatpush3.bf16.xpose.msra.mxu1 %v375_v15 }
  0x34   :  { %332 = vmatprep.subr.bf16.mxu0 %v377_v0  ;;  %352 = vmatprep.subr.bf16.mxu1 %v377_v0 }
  0x3b   :  { %333 = vmatpush3.bf16.xpose.msra.mxu0 %v367_v14  ;;  %353 = vmatpush3.bf16.xpose.msra.mxu1 %v376_v17 }
  0x42   :  { %335 = vmatmul.mubr.bf16.vlgmr.msra.gmra.mxu0 %v368_v16 }
 0x102   :  { %v140_v19 = vpop.f32.mrf.mxu0 }
 0x103   :  { %v141_v21 = vadd.f32 %v281_v18, %v140_v19 }
 0x104   :  { %v336_v20 = vpop.f32.mrf.mxu0 }
 0x105   :  { %v147_v25 = vmax.f32 %v141_v21, 0.0 }
 0x106   :  { %v143_v22 = vpop.f32.mrf.mxu0 }
 0x107   :  { %v144_v23 = vadd.f32 %v281_v18, %v143_v22 }
 0x108   :  { %v337_v24 = vpop.f32.mrf.mxu0 }
 0x109   :  { %v148_v26 = vmax.f32 %v144_v23, 0.0 }
 0x10b   :  { %v151_v27 = vpack.c.bf16 %v148_v26, %v147_v25 }
 0x10d   :  { %355 = vmatmul.mubr.bf16.vlgmr.msra.gmra.mxu1 %v151_v27 }
 0x1cd   :  { %v250_v29 = vpop.f32.mrf.mxu1 }
 0x1ce   :  { %v273_v30 = vadd.f32 %v299_v28, %v250_v29 }
 0x1cf   :  { %v356_v31 = vpop.f32.mrf.mxu1 }
 0x1d0   :  { %275 = vst [vmem:[%s477_s5] sm:$0xff] %v273_v30 }
 0x1d1   :  { %v253_v32 = vpop.f32.mrf.mxu1 }
 0x1d2   :  { %v274_v33 = vadd.f32 %v299_v28, %v253_v32 }
 0x1d3   :  { %v357_v34 = vpop.f32.mrf.mxu1 }
 0x1d4   :  { %276 = vst [vmem:[%s477_s5 + $0x8] sm:$0xff] %v274_v33 }

</bundles_post_ra>
